<compile_context>
chip_gen: v6e
topology: v6e:2x2x1
jax: 0.10.0
libtpu: 0.0.40
codegen_flags: <defaults>
</compile_context>

<pallas_src>
import functools

import jax
import jax.numpy as jnp
from jax import lax
from jax.experimental import pallas as pl
from jax.experimental.pallas import tpu as pltpu


def _mmd_kernel(src_ref, tgt_ref, out_ref,
                gxx_ref, gyy_ref, gxy_ref, xsq_ref, ysq_ref,
                *, batch, kernel_mul, kernel_num, bf16_gram):
    k = pl.program_id(0)

    # ---- init accumulators on the first K step -----------------------------
    @pl.when(k == 0)
    def _():
        gxx_ref[...] = jnp.zeros_like(gxx_ref)
        gyy_ref[...] = jnp.zeros_like(gyy_ref)
        gxy_ref[...] = jnp.zeros_like(gxy_ref)
        xsq_ref[...] = jnp.zeros_like(xsq_ref)
        ysq_ref[...] = jnp.zeros_like(ysq_ref)

    # ---- accumulate Gram / row-norm partials for this feature tile ---------
    x = src_ref[...]          # (B, TK) f32, zero-padded features => exact
    y = tgt_ref[...]

    xsq_ref[...] += jnp.sum(x * x, axis=1, keepdims=True)   # (B, 1)
    ysq_ref[...] += jnp.sum(y * y, axis=1, keepdims=True)

    if bf16_gram:
        xg = x.astype(jnp.bfloat16)
        yg = y.astype(jnp.bfloat16)
    else:
        xg, yg = x, y

    def gram(a, bm):
        # a @ bm.T on the MXU with f32 accumulation.
        return lax.dot_general(a, bm, (((1,), (1,)), ((), ())),
                               preferred_element_type=jnp.float32)

    gxx_ref[...] += gram(xg, xg)
    gyy_ref[...] += gram(yg, yg)
    gxy_ref[...] += gram(xg, yg)

    # ---- epilogue on the last K step ----------------------------------------
    @pl.when(k == pl.num_programs(0) - 1)
    def _():
        b = batch
        x_sq = xsq_ref[...]                 # (B, 1)
        y_sq = ysq_ref[...]

        # ||a_i - b_j||^2 = |a_i|^2 + |b_j|^2 - 2 a_i.b_j, clamped at 0
        # (rounding can give tiny negatives which would bias exp() above 1).
        l2_xx = jnp.maximum(x_sq + x_sq.T - 2.0 * gxx_ref[...], 0.0)
        l2_yy = jnp.maximum(y_sq + y_sq.T - 2.0 * gyy_ref[...], 0.0)
        l2_xy = jnp.maximum(x_sq + y_sq.T - 2.0 * gxy_ref[...], 0.0)

        # PyTorch computes self-distances as sum((v - v)^2) == exactly 0.
        row = lax.broadcasted_iota(jnp.int32, (b, b), 0)
        col = lax.broadcasted_iota(jnp.int32, (b, b), 1)
        off_diag = row != col
        zero = jnp.zeros((), jnp.float32)
        l2_xx = jnp.where(off_diag, l2_xx, zero)
        l2_yy = jnp.where(off_diag, l2_yy, zero)

        # bandwidth = sum(full (2B, 2B) L2) / (n^2 - n); sum(YX) == sum(XY).
        n = 2 * b
        sum_l2 = jnp.sum(l2_xx) + jnp.sum(l2_yy) + 2.0 * jnp.sum(l2_xy)
        bandwidth = sum_l2 / jnp.float32(n * n - n)
        bw_base = bandwidth / jnp.float32(kernel_mul ** (kernel_num // 2))

        def block_kernel_sum(l2):
            # sum_{i,j} sum_k exp(-l2[i,j] / (bw_base * kernel_mul**k))
            # All per-bandwidth terms are accumulated ELEMENTWISE (VPU) and a
            # single cross-lane jnp.sum (XLU) is issued per block.
            if float(kernel_mul) == 2.0:
                # One exp at the widest bandwidth; narrower bandwidths via
                # repeated squaring: exp(-l2/(w/2^k)) == exp(-l2/w) ** (2^k).
                inv_widest = 1.0 / (bw_base * jnp.float32(2.0 ** (kernel_num - 1)))
                e = jnp.exp(-l2 * inv_widest)
                acc = e
                for _ in range(kernel_num - 1):
                    e = e * e
                    acc = acc + e
            else:
                # Generic fallback: one exp per bandwidth; scalar reciprocal
                # folded into a multiply (no full-matrix divide).
                acc = jnp.zeros_like(l2)
                for i in range(kernel_num):
                    inv_bw = 1.0 / (bw_base * jnp.float32(kernel_mul ** i))
                    acc = acc + jnp.exp(-l2 * inv_bw)
            return jnp.sum(acc)

        s_xx = block_kernel_sum(l2_xx)
        s_yy = block_kernel_sum(l2_yy)
        s_xy = block_kernel_sum(l2_xy)

        # loss = mean(XX + YY - XY - YX) over (B, B); sum(YX) == sum(XY).
        out_ref[0, 0] = (s_xx + s_yy - 2.0 * s_xy) / jnp.float32(b * b)


def mmd_loss(source, target, *, kernel_mul=2.0, kernel_num=5, bf16_gram=False):
    """MMD loss matching MMD_loss.forward (fix_sigma=None)."""
    assert source.shape == target.shape and source.ndim == 2
    b, d = source.shape

    # Lane-align the MXU contraction axis; zero padding is exact for squared L2.
    dp = ((d + 127) // 128) * 128
    src = jnp.asarray(source, jnp.float32)
    tgt = jnp.asarray(target, jnp.float32)
    if dp != d:
        src = jnp.pad(src, ((0, 0), (0, dp - d)))
        tgt = jnp.pad(tgt, ((0, 0), (0, dp - d)))

    # Feature-axis (K) tile: largest of {1024, 512, 256, 128} dividing dp so
    # the reduction grid needs no extra padding.
    tk = 128
    for cand in (1024, 512, 256, 128):
        if dp % cand == 0:
            tk = cand
            break
    kt = dp // tk

    # Generation-aware VMEM cap: leave ~1/8 of physical VMEM for compiler
    # scratch (v7x: ~56 MiB of 64; v5e/v6e: ~112 MiB of 128).
    phys = 128 * 1024 * 1024
    try:
        phys = int(getattr(pltpu.get_tpu_info(), "vmem_capacity_bytes", phys))
    except Exception:
        pass
    cap = (phys * 7) // 8
    bpad = max(b, 128)
    # inputs (2 arrays x 2 pipeline buffers x (B,TK)) + ~10 (B,B)-ish f32 tiles
    est = 4 * (2 * 2 * b * tk + 10 * b * bpad)
    vmem_limit = int(min(cap, max(32 * 1024 * 1024, 2 * est)))

    kernel = functools.partial(
        _mmd_kernel, batch=b, kernel_mul=kernel_mul, kernel_num=kernel_num,
        bf16_gram=bf16_gram,
    )

    out = pl.pallas_call(
        kernel,
        out_shape=jax.ShapeDtypeStruct((1, 1), jnp.float32),
        grid_spec=pltpu.PrefetchScalarGridSpec(
            num_scalar_prefetch=0,
            grid=(kt,),
            in_specs=[
                pl.BlockSpec((b, tk), lambda k: (0, k)),
                pl.BlockSpec((b, tk), lambda k: (0, k)),
            ],
            out_specs=pl.BlockSpec(memory_space=pltpu.MemorySpace.SMEM),
            scratch_shapes=[
                pltpu.VMEM((b, b), jnp.float32),   # Gram XX accumulator
                pltpu.VMEM((b, b), jnp.float32),   # Gram YY accumulator
                pltpu.VMEM((b, b), jnp.float32),   # Gram XY accumulator
                pltpu.VMEM((b, 1), jnp.float32),   # |x_i|^2 partials
                pltpu.VMEM((b, 1), jnp.float32),   # |y_i|^2 partials
            ],
        ),
        compiler_params=pltpu.CompilerParams(
            dimension_semantics=("arbitrary",),
            vmem_limit_bytes=vmem_limit,
        ),
    )(src, tgt)
    return out[0, 0]


def _mmd_loss_ref(source, target, kernel_mul=2.0, kernel_num=5):
    # Pure-JAX mirror of the PyTorch module for a sanity check.
    b = source.shape[0]
    total = jnp.concatenate([source, target], axis=0)
    n = total.shape[0]
    diff = total[:, None, :] - total[None, :, :]
    l2 = jnp.sum(diff * diff, axis=2)
    bandwidth = jnp.sum(l2) / (n * n - n)
    bandwidth = bandwidth / (kernel_mul ** (kernel_num // 2))
    kernels = sum(jnp.exp(-l2 / (bandwidth * kernel_mul ** i)) for i in range(kernel_num))
    xx = kernels[:b, :b]
    yy = kernels[b:, b:]
    xy = kernels[:b, b:]
    yx = kernels[b:, :b]
    return jnp.mean(xx + yy - xy - yx)


if __name__ == "__main__":
    key = jax.random.PRNGKey(0)

    # Case 1: small shapes consistent with the module (single K step).
    k1, k2 = jax.random.split(key)
    batch, features = 8, 32
    source = jax.random.normal(k1, (batch, features), dtype=jnp.float32)
    target = jax.random.normal(k2, (batch, features), dtype=jnp.float32) + 0.5

    loss = mmd_loss(source, target, kernel_mul=2.0, kernel_num=5)
    loss = jax.block_until_ready(loss)
    ref = _mmd_loss_ref(source, target, kernel_mul=2.0, kernel_num=5)
    assert jnp.allclose(loss, ref, rtol=1e-4, atol=1e-4), (loss, ref)

    # Case 2: exercises the multi-step feature-reduction grid (kt > 1).
    k3, k4 = jax.random.split(k2)
    batch2, features2 = 16, 1280   # dp=1280 -> tk=256, 5 grid steps
    source2 = jax.random.normal(k3, (batch2, features2), dtype=jnp.float32)
    target2 = jax.random.normal(k4, (batch2, features2), dtype=jnp.float32) + 0.5

    loss2 = mmd_loss(source2, target2, kernel_mul=2.0, kernel_num=5)
    loss2 = jax.block_until_ready(loss2)
    ref2 = _mmd_loss_ref(source2, target2, kernel_mul=2.0, kernel_num=5)
    assert jnp.allclose(loss2, ref2, rtol=1e-4, atol=1e-4), (loss2, ref2)

    print("KERNEL_OK")
</pallas_src>

<mosaic_0001>
module attributes {stable_mosaic.version = 11 : i64} {
  func.func @_mmd_kernel(%arg0: i32, %arg1: memref<8x128xf32, #tpu.memory_space<vmem>>, %arg2: memref<8x128xf32, #tpu.memory_space<vmem>>, %arg3: memref<1x1xf32, #tpu.memory_space<smem>>, %arg4: memref<8x8xf32, #tpu.memory_space<vmem>>, %arg5: memref<8x8xf32, #tpu.memory_space<vmem>>, %arg6: memref<8x8xf32, #tpu.memory_space<vmem>>, %arg7: memref<8x1xf32, #tpu.memory_space<vmem>>, %arg8: memref<8x1xf32, #tpu.memory_space<vmem>>) attributes {dimension_semantics = [#tpu.dimension_semantics<arbitrary>], iteration_bounds = array<i64: 1>, scalar_prefetch = 0 : i64, scratch_operands = 5 : i64, tpu.core_type = #tpu.core_type<tc>, window_params = [{transform_indices = @transform_0, window_bounds = array<i64: 8, 128>}, {transform_indices = @transform_1, window_bounds = array<i64: 8, 128>}, {transform_indices = @transform_2, window_bounds = array<i64: 1, 1>}]} {
    %c0_i32 = arith.constant 0 : i32
    %0 = arith.cmpi eq, %arg0, %c0_i32 : i32
    %1 = arith.extui %0 : i1 to i32
    %c0_i32_0 = arith.constant 0 : i32
    %2 = arith.cmpi ne, %1, %c0_i32_0 : i32
    scf.if %2 {
      %cst_30 = arith.constant 0.000000e+00 : f32
      %32 = vector.broadcast %cst_30 : f32 to vector<8x8xf32>
      %c0_31 = arith.constant 0 : index
      %c0_32 = arith.constant 0 : index
      %33 = vector.load %arg4[%c0_31, %c0_32] : memref<8x8xf32, #tpu.memory_space<vmem>>, vector<8x8xf32>
      tpu.vector_store %arg4[%c0_31, %c0_32], %32 {strides = array<i32>} : memref<8x8xf32, #tpu.memory_space<vmem>>, vector<8x8xf32>,
      %cst_33 = arith.constant 0.000000e+00 : f32
      %34 = vector.broadcast %cst_33 : f32 to vector<8x8xf32>
      %c0_34 = arith.constant 0 : index
      %c0_35 = arith.constant 0 : index
      %35 = vector.load %arg5[%c0_34, %c0_35] : memref<8x8xf32, #tpu.memory_space<vmem>>, vector<8x8xf32>
      tpu.vector_store %arg5[%c0_34, %c0_35], %34 {strides = array<i32>} : memref<8x8xf32, #tpu.memory_space<vmem>>, vector<8x8xf32>,
      %cst_36 = arith.constant 0.000000e+00 : f32
      %36 = vector.broadcast %cst_36 : f32 to vector<8x8xf32>
      %c0_37 = arith.constant 0 : index
      %c0_38 = arith.constant 0 : index
      %37 = vector.load %arg6[%c0_37, %c0_38] : memref<8x8xf32, #tpu.memory_space<vmem>>, vector<8x8xf32>
      tpu.vector_store %arg6[%c0_37, %c0_38], %36 {strides = array<i32>} : memref<8x8xf32, #tpu.memory_space<vmem>>, vector<8x8xf32>,
      %cst_39 = arith.constant 0.000000e+00 : f32
      %38 = vector.broadcast %cst_39 : f32 to vector<8x1xf32>
      %c0_40 = arith.constant 0 : index
      %c0_41 = arith.constant 0 : index
      %39 = vector.load %arg7[%c0_40, %c0_41] : memref<8x1xf32, #tpu.memory_space<vmem>>, vector<8x1xf32>
      tpu.vector_store %arg7[%c0_40, %c0_41], %38 {strides = array<i32>} : memref<8x1xf32, #tpu.memory_space<vmem>>, vector<8x1xf32>,
      %cst_42 = arith.constant 0.000000e+00 : f32
      %40 = vector.broadcast %cst_42 : f32 to vector<8x1xf32>
      %c0_43 = arith.constant 0 : index
      %c0_44 = arith.constant 0 : index
      %41 = vector.load %arg8[%c0_43, %c0_44] : memref<8x1xf32, #tpu.memory_space<vmem>>, vector<8x1xf32>
      tpu.vector_store %arg8[%c0_43, %c0_44], %40 {strides = array<i32>} : memref<8x1xf32, #tpu.memory_space<vmem>>, vector<8x1xf32>,
    } else {
    }
    %c0 = arith.constant 0 : index
    %c0_1 = arith.constant 0 : index
    %3 = vector.load %arg1[%c0, %c0_1] : memref<8x128xf32, #tpu.memory_space<vmem>>, vector<8x128xf32>
    %c0_2 = arith.constant 0 : index
    %c0_3 = arith.constant 0 : index
    %4 = vector.load %arg2[%c0_2, %c0_3] : memref<8x128xf32, #tpu.memory_space<vmem>>, vector<8x128xf32>
    %c0_4 = arith.constant 0 : index
    %c0_5 = arith.constant 0 : index
    %5 = vector.load %arg7[%c0_4, %c0_5] : memref<8x1xf32, #tpu.memory_space<vmem>>, vector<8x1xf32>
    %6 = arith.mulf %3, %3 : vector<8x128xf32>
    %cst = arith.constant dense<0.000000e+00> : vector<8xf32>
    %7 = vector.multi_reduction <add>, %6, %cst [1] : vector<8x128xf32> to vector<8xf32>
    %8 = vector.shape_cast %7 : vector<8xf32> to vector<8x1xf32>
    %9 = arith.addf %5, %8 : vector<8x1xf32>
    %c0_6 = arith.constant 0 : index
    %c0_7 = arith.constant 0 : index
    %10 = vector.load %arg7[%c0_6, %c0_7] : memref<8x1xf32, #tpu.memory_space<vmem>>, vector<8x1xf32>
    tpu.vector_store %arg7[%c0_6, %c0_7], %9 {strides = array<i32>} : memref<8x1xf32, #tpu.memory_space<vmem>>, vector<8x1xf32>,
    %c0_8 = arith.constant 0 : index
    %c0_9 = arith.constant 0 : index
    %11 = vector.load %arg8[%c0_8, %c0_9] : memref<8x1xf32, #tpu.memory_space<vmem>>, vector<8x1xf32>
    %12 = arith.mulf %4, %4 : vector<8x128xf32>
    %cst_10 = arith.constant dense<0.000000e+00> : vector<8xf32>
    %13 = vector.multi_reduction <add>, %12, %cst_10 [1] : vector<8x128xf32> to vector<8xf32>
    %14 = vector.shape_cast %13 : vector<8xf32> to vector<8x1xf32>
    %15 = arith.addf %11, %14 : vector<8x1xf32>
    %c0_11 = arith.constant 0 : index
    %c0_12 = arith.constant 0 : index
    %16 = vector.load %arg8[%c0_11, %c0_12] : memref<8x1xf32, #tpu.memory_space<vmem>>, vector<8x1xf32>
    tpu.vector_store %arg8[%c0_11, %c0_12], %15 {strides = array<i32>} : memref<8x1xf32, #tpu.memory_space<vmem>>, vector<8x1xf32>,
    %c0_13 = arith.constant 0 : index
    %c0_14 = arith.constant 0 : index
    %17 = vector.load %arg4[%c0_13, %c0_14] : memref<8x8xf32, #tpu.memory_space<vmem>>, vector<8x8xf32>
    %cst_15 = arith.constant dense<0.000000e+00> : vector<8x8xf32>
    %18 = tpu.matmul %3, %3, %cst_15 {dimension_numbers = #tpu.dot_dimension_numbers<[1], [1], [0], [0], [0, 0, 1, 0], [], []>} : vector<8x128xf32>, vector<8x128xf32>, vector<8x8xf32> -> vector<8x8xf32>
    %19 = arith.addf %17, %18 : vector<8x8xf32>
    %c0_16 = arith.constant 0 : index
    %c0_17 = arith.constant 0 : index
    %20 = vector.load %arg4[%c0_16, %c0_17] : memref<8x8xf32, #tpu.memory_space<vmem>>, vector<8x8xf32>
    tpu.vector_store %arg4[%c0_16, %c0_17], %19 {strides = array<i32>} : memref<8x8xf32, #tpu.memory_space<vmem>>, vector<8x8xf32>,
    %c0_18 = arith.constant 0 : index
    %c0_19 = arith.constant 0 : index
    %21 = vector.load %arg5[%c0_18, %c0_19] : memref<8x8xf32, #tpu.memory_space<vmem>>, vector<8x8xf32>
    %cst_20 = arith.constant dense<0.000000e+00> : vector<8x8xf32>
    %22 = tpu.matmul %4, %4, %cst_20 {dimension_numbers = #tpu.dot_dimension_numbers<[1], [1], [0], [0], [0, 0, 1, 0], [], []>} : vector<8x128xf32>, vector<8x128xf32>, vector<8x8xf32> -> vector<8x8xf32>
    %23 = arith.addf %21, %22 : vector<8x8xf32>
    %c0_21 = arith.constant 0 : index
    %c0_22 = arith.constant 0 : index
    %24 = vector.load %arg5[%c0_21, %c0_22] : memref<8x8xf32, #tpu.memory_space<vmem>>, vector<8x8xf32>
    tpu.vector_store %arg5[%c0_21, %c0_22], %23 {strides = array<i32>} : memref<8x8xf32, #tpu.memory_space<vmem>>, vector<8x8xf32>,
    %c0_23 = arith.constant 0 : index
    %c0_24 = arith.constant 0 : index
    %25 = vector.load %arg6[%c0_23, %c0_24] : memref<8x8xf32, #tpu.memory_space<vmem>>, vector<8x8xf32>
    %cst_25 = arith.constant dense<0.000000e+00> : vector<8x8xf32>
    %26 = tpu.matmul %3, %4, %cst_25 {dimension_numbers = #tpu.dot_dimension_numbers<[1], [1], [0], [0], [0, 0, 1, 0], [], []>} : vector<8x128xf32>, vector<8x128xf32>, vector<8x8xf32> -> vector<8x8xf32>
    %27 = arith.addf %25, %26 : vector<8x8xf32>
    %c0_26 = arith.constant 0 : index
    %c0_27 = arith.constant 0 : index
    %28 = vector.load %arg6[%c0_26, %c0_27] : memref<8x8xf32, #tpu.memory_space<vmem>>, vector<8x8xf32>
    tpu.vector_store %arg6[%c0_26, %c0_27], %27 {strides = array<i32>} : memref<8x8xf32, #tpu.memory_space<vmem>>, vector<8x8xf32>,
    %c0_i32_28 = arith.constant 0 : i32
    %29 = arith.cmpi eq, %arg0, %c0_i32_28 : i32
    %30 = arith.extui %29 : i1 to i32
    %c0_i32_29 = arith.constant 0 : i32
    %31 = arith.cmpi ne, %30, %c0_i32_29 : i32
    scf.if %31 {
      %c0_30 = arith.constant 0 : index
      %c0_31 = arith.constant 0 : index
      %32 = vector.load %arg7[%c0_30, %c0_31] : memref<8x1xf32, #tpu.memory_space<vmem>>, vector<8x1xf32>
      %c0_32 = arith.constant 0 : index
      %c0_33 = arith.constant 0 : index
      %33 = vector.load %arg8[%c0_32, %c0_33] : memref<8x1xf32, #tpu.memory_space<vmem>>, vector<8x1xf32>
      %34 = tpu.transpose %32, [1, 0] : vector<8x1xf32> -> vector<1x8xf32>
      %35 = vector.broadcast %32 : vector<8x1xf32> to vector<8x8xf32>
      %36 = vector.broadcast %34 : vector<1x8xf32> to vector<8x8xf32>
      %37 = arith.addf %35, %36 : vector<8x8xf32>
      %c0_34 = arith.constant 0 : index
      %c0_35 = arith.constant 0 : index
      %38 = vector.load %arg4[%c0_34, %c0_35] : memref<8x8xf32, #tpu.memory_space<vmem>>, vector<8x8xf32>
      %cst_36 = arith.constant 2.000000e+00 : f32
      %39 = vector.broadcast %cst_36 : f32 to vector<8x8xf32>
      %40 = arith.mulf %39, %38 : vector<8x8xf32>
      %41 = arith.subf %37, %40 : vector<8x8xf32>
      %cst_37 = arith.constant 0.000000e+00 : f32
      %42 = vector.broadcast %cst_37 : f32 to vector<8x8xf32>
      %43 = arith.maximumf %41, %42 : vector<8x8xf32>
      %44 = tpu.transpose %33, [1, 0] : vector<8x1xf32> -> vector<1x8xf32>
      %45 = vector.broadcast %33 : vector<8x1xf32> to vector<8x8xf32>
      %46 = vector.broadcast %44 : vector<1x8xf32> to vector<8x8xf32>
      %47 = arith.addf %45, %46 : vector<8x8xf32>
      %c0_38 = arith.constant 0 : index
      %c0_39 = arith.constant 0 : index
      %48 = vector.load %arg5[%c0_38, %c0_39] : memref<8x8xf32, #tpu.memory_space<vmem>>, vector<8x8xf32>
      %cst_40 = arith.constant 2.000000e+00 : f32
      %49 = vector.broadcast %cst_40 : f32 to vector<8x8xf32>
      %50 = arith.mulf %49, %48 : vector<8x8xf32>
      %51 = arith.subf %47, %50 : vector<8x8xf32>
      %cst_41 = arith.constant 0.000000e+00 : f32
      %52 = vector.broadcast %cst_41 : f32 to vector<8x8xf32>
      %53 = arith.maximumf %51, %52 : vector<8x8xf32>
      %54 = tpu.transpose %33, [1, 0] : vector<8x1xf32> -> vector<1x8xf32>
      %55 = vector.broadcast %32 : vector<8x1xf32> to vector<8x8xf32>
      %56 = vector.broadcast %54 : vector<1x8xf32> to vector<8x8xf32>
      %57 = arith.addf %55, %56 : vector<8x8xf32>
      %c0_42 = arith.constant 0 : index
      %c0_43 = arith.constant 0 : index
      %58 = vector.load %arg6[%c0_42, %c0_43] : memref<8x8xf32, #tpu.memory_space<vmem>>, vector<8x8xf32>
      %cst_44 = arith.constant 2.000000e+00 : f32
      %59 = vector.broadcast %cst_44 : f32 to vector<8x8xf32>
      %60 = arith.mulf %59, %58 : vector<8x8xf32>
      %61 = arith.subf %57, %60 : vector<8x8xf32>
      %cst_45 = arith.constant 0.000000e+00 : f32
      %62 = vector.broadcast %cst_45 : f32 to vector<8x8xf32>
      %63 = arith.maximumf %61, %62 : vector<8x8xf32>
      %64 = tpu.iota {dimensions = array<i32: 0>} : vector<8x8xi32>
      %65 = tpu.iota {dimensions = array<i32: 1>} : vector<8x8xi32>
      %66 = arith.cmpi ne, %64, %65 : vector<8x8xi32>
      %cst_46 = arith.constant 0.000000e+00 : f32
      %67 = vector.broadcast %cst_46 : f32 to vector<8x8xf32>
      %68 = arith.select %66, %43, %67 : vector<8x8xi1>, vector<8x8xf32>
      %cst_47 = arith.constant 0.000000e+00 : f32
      %69 = vector.broadcast %cst_47 : f32 to vector<8x8xf32>
      %70 = arith.select %66, %53, %69 : vector<8x8xi1>, vector<8x8xf32>
      %71 = vector.shape_cast %68 : vector<8x8xf32> to vector<1x8x8xf32>
      %cst_48 = arith.constant dense<0.000000e+00> : vector<1xf32>
      %72 = vector.multi_reduction <add>, %71, %cst_48 [1, 2] : vector<1x8x8xf32> to vector<1xf32>
      %73 = vector.shape_cast %72 : vector<1xf32> to vector<1x1x1xf32>
      %74 = vector.extract %73[0, 0, 0] : f32 from vector<1x1x1xf32>
      %75 = vector.shape_cast %70 : vector<8x8xf32> to vector<1x8x8xf32>
      %cst_49 = arith.constant dense<0.000000e+00> : vector<1xf32>
      %76 = vector.multi_reduction <add>, %75, %cst_49 [1, 2] : vector<1x8x8xf32> to vector<1xf32>
      %77 = vector.shape_cast %76 : vector<1xf32> to vector<1x1x1xf32>
      %78 = vector.extract %77[0, 0, 0] : f32 from vector<1x1x1xf32>
      %79 = arith.addf %74, %78 : f32
      %80 = vector.shape_cast %63 : vector<8x8xf32> to vector<1x8x8xf32>
      %cst_50 = arith.constant dense<0.000000e+00> : vector<1xf32>
      %81 = vector.multi_reduction <add>, %80, %cst_50 [1, 2] : vector<1x8x8xf32> to vector<1xf32>
      %82 = vector.shape_cast %81 : vector<1xf32> to vector<1x1x1xf32>
      %83 = vector.extract %82[0, 0, 0] : f32 from vector<1x1x1xf32>
      %cst_51 = arith.constant 2.000000e+00 : f32
      %84 = arith.mulf %cst_51, %83 : f32
      %85 = arith.addf %79, %84 : f32
      %cst_52 = arith.constant 2.400000e+02 : f32
      %86 = arith.divf %85, %cst_52 : f32
      %cst_53 = arith.constant 4.000000e+00 : f32
      %87 = arith.divf %86, %cst_53 : f32
      %cst_54 = arith.constant 1.600000e+01 : f32
      %88 = arith.mulf %87, %cst_54 : f32
      %cst_55 = arith.constant 1.000000e+00 : f32
      %89 = arith.divf %cst_55, %88 : f32
      %cst_56 = arith.constant 0.000000e+00 : f32
      %90 = vector.broadcast %cst_56 : f32 to vector<8x8xf32>
      %91 = arith.subf %90, %68 : vector<8x8xf32>
      %92 = vector.broadcast %89 : f32 to vector<8x8xf32>
      %93 = arith.mulf %91, %92 : vector<8x8xf32>
      %94 = math.exp %93 : vector<8x8xf32>
      %95 = arith.mulf %94, %94 : vector<8x8xf32>
      %96 = arith.addf %94, %95 : vector<8x8xf32>
      %97 = arith.mulf %95, %95 : vector<8x8xf32>
      %98 = arith.addf %96, %97 : vector<8x8xf32>
      %99 = arith.mulf %97, %97 : vector<8x8xf32>
      %100 = arith.addf %98, %99 : vector<8x8xf32>
      %101 = arith.mulf %99, %99 : vector<8x8xf32>
      %102 = arith.addf %100, %101 : vector<8x8xf32>
      %103 = vector.shape_cast %102 : vector<8x8xf32> to vector<1x8x8xf32>
      %cst_57 = arith.constant dense<0.000000e+00> : vector<1xf32>
      %104 = vector.multi_reduction <add>, %103, %cst_57 [1, 2] : vector<1x8x8xf32> to vector<1xf32>
      %105 = vector.shape_cast %104 : vector<1xf32> to vector<1x1x1xf32>
      %106 = vector.extract %105[0, 0, 0] : f32 from vector<1x1x1xf32>
      %cst_58 = arith.constant 1.600000e+01 : f32
      %107 = arith.mulf %87, %cst_58 : f32
      %cst_59 = arith.constant 1.000000e+00 : f32
      %108 = arith.divf %cst_59, %107 : f32
      %cst_60 = arith.constant 0.000000e+00 : f32
      %109 = vector.broadcast %cst_60 : f32 to vector<8x8xf32>
      %110 = arith.subf %109, %70 : vector<8x8xf32>
      %111 = vector.broadcast %108 : f32 to vector<8x8xf32>
      %112 = arith.mulf %110, %111 : vector<8x8xf32>
      %113 = math.exp %112 : vector<8x8xf32>
      %114 = arith.mulf %113, %113 : vector<8x8xf32>
      %115 = arith.addf %113, %114 : vector<8x8xf32>
      %116 = arith.mulf %114, %114 : vector<8x8xf32>
      %117 = arith.addf %115, %116 : vector<8x8xf32>
      %118 = arith.mulf %116, %116 : vector<8x8xf32>
      %119 = arith.addf %117, %118 : vector<8x8xf32>
      %120 = arith.mulf %118, %118 : vector<8x8xf32>
      %121 = arith.addf %119, %120 : vector<8x8xf32>
      %122 = vector.shape_cast %121 : vector<8x8xf32> to vector<1x8x8xf32>
      %cst_61 = arith.constant dense<0.000000e+00> : vector<1xf32>
      %123 = vector.multi_reduction <add>, %122, %cst_61 [1, 2] : vector<1x8x8xf32> to vector<1xf32>
      %124 = vector.shape_cast %123 : vector<1xf32> to vector<1x1x1xf32>
      %125 = vector.extract %124[0, 0, 0] : f32 from vector<1x1x1xf32>
      %cst_62 = arith.constant 1.600000e+01 : f32
      %126 = arith.mulf %87, %cst_62 : f32
      %cst_63 = arith.constant 1.000000e+00 : f32
      %127 = arith.divf %cst_63, %126 : f32
      %cst_64 = arith.constant 0.000000e+00 : f32
      %128 = vector.broadcast %cst_64 : f32 to vector<8x8xf32>
      %129 = arith.subf %128, %63 : vector<8x8xf32>
      %130 = vector.broadcast %127 : f32 to vector<8x8xf32>
      %131 = arith.mulf %129, %130 : vector<8x8xf32>
      %132 = math.exp %131 : vector<8x8xf32>
      %133 = arith.mulf %132, %132 : vector<8x8xf32>
      %134 = arith.addf %132, %133 : vector<8x8xf32>
      %135 = arith.mulf %133, %133 : vector<8x8xf32>
      %136 = arith.addf %134, %135 : vector<8x8xf32>
      %137 = arith.mulf %135, %135 : vector<8x8xf32>
      %138 = arith.addf %136, %137 : vector<8x8xf32>
      %139 = arith.mulf %137, %137 : vector<8x8xf32>
      %140 = arith.addf %138, %139 : vector<8x8xf32>
      %141 = vector.shape_cast %140 : vector<8x8xf32> to vector<1x8x8xf32>
      %cst_65 = arith.constant dense<0.000000e+00> : vector<1xf32>
      %142 = vector.multi_reduction <add>, %141, %cst_65 [1, 2] : vector<1x8x8xf32> to vector<1xf32>
      %143 = vector.shape_cast %142 : vector<1xf32> to vector<1x1x1xf32>
      %144 = vector.extract %143[0, 0, 0] : f32 from vector<1x1x1xf32>
      %145 = arith.addf %106, %125 : f32
      %cst_66 = arith.constant 2.000000e+00 : f32
      %146 = arith.mulf %cst_66, %144 : f32
      %147 = arith.subf %145, %146 : f32
      %cst_67 = arith.constant 6.400000e+01 : f32
      %148 = arith.divf %147, %cst_67 : f32
      %c0_68 = arith.constant 0 : index
      %c0_69 = arith.constant 0 : index
      %149 = memref.load %arg3[%c0_68, %c0_69] : memref<1x1xf32, #tpu.memory_space<smem>>
      memref.store %148, %arg3[%c0_68, %c0_69] : memref<1x1xf32, #tpu.memory_space<smem>>
    } else {
    }
    return
  }
  func.func @transform_0(%arg0: i32) -> (i32, i32) {
    %c0_i32 = arith.constant 0 : i32
    %c0_i32_0 = arith.constant 0 : i32
    return %c0_i32, %arg0 : i32, i32
  }
  func.func @transform_1(%arg0: i32) -> (i32, i32) {
    %c0_i32 = arith.constant 0 : i32
    %c0_i32_0 = arith.constant 0 : i32
    return %c0_i32, %arg0 : i32, i32
  }
  func.func @transform_2(%arg0: i32) -> (i32, i32) {
    %c0_i32 = arith.constant 0 : i32
    %c0_i32_0 = arith.constant 0 : i32
    %c0_i32_1 = arith.constant 0 : i32
    return %c0_i32, %c0_i32_0 : i32, i32
  }
}

</mosaic_0001>

<bundles_post_ra>
// kernel: tpu_custom_call.1
= control target key start
LH: loop header
LB: loop body
LE: loop exit
PB: predicated region body
PF: predicated region fallthrough
CT: control target
= control target key end

     0   :  { %7 = vsyncpa [#allocation8], 0  ;;  %s684_s0 = inlined_call_operand.hbm [shape: f32[8,128], index: 0, kind: input, shape index: {}]   ;;  %s685_s1 = inlined_call_operand.hbm [shape: f32[8,128], index: 1, kind: input, shape index: {}]   ;;  %s686_s2 = inlined_call_operand.hbm [shape: f32[1,1], index: 2, kind: output, shape index: {}]  }
   0x1   :  { %8 = vsyncpa [#allocation11], 0 }
   0x2   :  { %9 = vsyncpa [#allocation9], 0  ;;  %s629_s9 = smov [#allocation7]   ;;  %s630_s11 = smov [#allocation10]  }
   0x3   :  { %s16_s10 = sshll.u32 %s629_s9, 4  ;;  %s26_s12 = sshll.u32 %s630_s11, 4  ;;  %s17_s10 = int_to_ptr.vmem [resolvable:$true] %s16_s10  ;;  %s27_s12 = int_to_ptr.vmem [resolvable:$true] %s26_s12 }
   0x4   :  { %s583_s13 = scalar_lea.vmem %s17_s10, 128  ;;  %p588_p1 = scmp.lt.s32.totalorder %s17_s10, %s17_s10 }
   0x5   :  { %p584_p0 = scmp.ne.s32.totalorder %s17_s10, %s583_s13  ;;  %p589_p2 = scmp.lt.s32.totalorder %s583_s13, %s583_s13 }
   0x7   :  { %p590_p3 = por %p589_p2, %p588_p1 }
   0x9   :  { %p591_p4 = pnand %p590_p3, %p584_p0 }
   0xb   :  { %594 = shalt.err (!%p591_p4)
}
   0xc   :  { %19 = dma.hbm_to_vmem [thread:$0]  %s684_s0, 128, %s17_s10, [#allocation8]  }
   0xd   :  { %s603_s16 = scalar_lea.vmem %s27_s12, 128  ;;  %p608_p6 = scmp.lt.s32.totalorder %s27_s12, %s27_s12 }
   0xe   :  { %p604_p5 = scmp.ne.s32.totalorder %s27_s12, %s603_s16  ;;  %p609_p7 = scmp.lt.s32.totalorder %s603_s16, %s603_s16 }
  0x10   :  { %p610_p8 = por %p609_p7, %p608_p6 }
  0x12   :  { %p611_p9 = pnand %p610_p8, %p604_p5 }
  0x14   :  { %614 = shalt.err (!%p611_p9)
}
  0x15   :  { %29 = dma.hbm_to_vmem [thread:$0]  %s685_s1, 128, %s27_s12, [#allocation11]  }
  0x16   :  { %623 = dma.done.wait [#allocation8], 128  }
  0x17   :  { %624 = vsyncadd [#allocation8], 4294967168 }
  0x18   :  { %625 = dma.done.wait [#allocation11], 128  }
  0x19   :  { %626 = vsyncadd [#allocation11], 4294967168  ;;  %vm44_vm0 = vcmask 7168   ;;  %v631_v0 = vmov 0.0   ;;  %vm632_vm1 = vmmov 0   ;;  %v47_v1 = vld [vmem:[#allocation7] sm:$0xff]  ;;  %v324_v26 = vlaneseq }
  0x1a   :  { %530 = vmatprep.subr.mxu0 %v631_v0  ;;  %532 = vmatprep.mubr.msk.f32.mxu0 %vm632_vm1, %v631_v0  ;;  %45 = vst.msk [vmem:[#allocation5] sm:$0xff] %vm44_vm0, %v631_v0  ;;  %46 = vst.msk [vmem:[#allocation6] sm:$0xff] %vm44_vm0, %v631_v0  ;;  %v48_v2 = vld [vmem:[#allocation10] sm:$0xff]  ;;  %v50_v3 = vmul.f32 %v47_v1, %v47_v1  ;;  %v633_v5 = vmov 0   ;;  %vm40_vm2 = vcmask 64512   ;;  %s634_s6 = smov [#allocation12]  }
  0x1b   :  { %535 = vmatprep.subr.mxu1 %v631_v0  ;;  %537 = vmatprep.mubr.msk.f32.mxu1 %vm632_vm1, %v631_v0  ;;  %v57_v4 = vmul.f32 %v48_v2, %v48_v2  ;;  %41 = vst.msk [vmem:[#allocation2] sm:$0xff] %vm40_vm2, %v631_v0  ;;  %42 = vst.msk [vmem:[#allocation3] sm:$0xff] %vm40_vm2, %v631_v0  ;;  %v325_v27 = vshrl.u32 %v324_v26, 7  ;;  %v387_v34 = vand.u32 127, %v324_v26 }
  0x1c   :  { %531 = vmatpush3.xpose.msra.mxu0 %v47_v1  ;;  %536 = vmatpush3.xpose.msra.mxu1 %v48_v2  ;;  %43 = vst.msk [vmem:[#allocation4] sm:$0xff] %vm40_vm2, %v631_v0 }
  0x1d   :  { %540 = vmatprep.subr.mxu0 %v631_v0  ;;  %51 = vadd.xlane.f32.xlu0 %v50_v3  ;;  %v326_v28 = vsub.s32 0, %v325_v27  ;;  %vm388_vm3 = vcmp.ne.s32.totalorder %v325_v27, %v387_v34 }
  0x1e   :  { %565 = vset.pattern.permute.xlu1 %v633_v5 }
  0x1f   :  { %533 = vmatmul.mubr.f32.vlgmr.msra.gmra.mxu0 %v47_v1  ;;  %538 = vmatmul.mubr.f32.vlgmr.msra.gmra.mxu1 %v48_v2 }
  0x20   :  { %541 = vmatpush3.xpose.msra.mxu0 %v48_v2  ;;  %542 = vmatprep.mubr.msk.f32.mxu0 %vm632_vm1, %v631_v0 }
  0x21   :  { %58 = vadd.xlane.f32.xlu0 %v57_v4  ;;  %v49_v6 = vld [vmem:[#allocation5] sm:$0xff]  ;;  %v56_v9 = vld [vmem:[#allocation6] sm:$0xff] }
  0x22   :  { %v62_v14 = vld [vmem:[#allocation2] sm:$0xff]  ;;  %v136_v15 = vld [vmem:[#allocation3] sm:$0xff] }
  0x23   :  { %543 = vmatmul.mubr.f32.vlgmr.msra.gmra.mxu0 %v47_v1  ;;  %v209_v21 = vld [vmem:[#allocation4] sm:$0xff] }
  0xa6   :  { %v52_v7 = vpop.xlane.xlu0 %51 }
  0xa7   :  { %v53_v8 = vadd.f32 %v52_v7, %v49_v6 }
  0xa9   :  { %55 = vst.msk [vmem:[#allocation5] sm:$0xff] %vm44_vm0, %v53_v8 }
  0xaa   :  { %v59_v10 = vpop.xlane.xlu0 %58 }
  0xab   :  { %v60_v11 = vadd.f32 %v59_v10, %v56_v9 }
  0xad   :  { %61 = vst.msk [vmem:[#allocation6] sm:$0xff] %vm44_vm0, %v60_v11 }
  0xb0   :  { %v285_v12 = vld [vmem:[#allocation5] sm:$0xff] }
  0xb1   :  { %287 = vxpose.xlu0.b32.start.end [1/1] (short) (narrow) %v285_v12, 8  ;;  %321 = vperm.xlu1 %565, %v285_v12  }
  0xb4   :  { %v286_v13 = vld [vmem:[#allocation6] sm:$0xff] }
  0xb5   :  { %367 = vperm.xlu1 %565, %v286_v13  }
  0xda   :  { %566 = vset.pattern.permute.xlu0 %v633_v5 }
  0xde   :  { %333 = vxpose.xlu1.b32.start.end [1/1] (short) (narrow) %v286_v13, 8 }
  0xdf   :  { %v129_v16 = vpop.f32.mrf.mxu0  ;;  %v203_v17 = vpop.f32.mrf.mxu1 }
  0xe0   :  { %v133_v18 = vadd.f32 %v129_v16, %v62_v14  ;;  %v207_v19 = vadd.f32 %v203_v17, %v136_v15 }
  0xe1   :  { %v534_v20 = vpop.f32.mrf.mxu0  ;;  %v539_v22 = vpop.f32.mrf.mxu1 }
  0xe2   :  { %135 = vst.msk [vmem:[#allocation2] sm:$0xff] %vm40_vm2, %v133_v18  ;;  %208 = vst.msk [vmem:[#allocation3] sm:$0xff] %vm40_vm2, %v207_v19 }
  0xe3   :  { %v276_v23 = vpop.f32.mrf.mxu0 }
  0xe4   :  { %v280_v24 = vadd.f32 %v276_v23, %v209_v21 }
  0xe5   :  { %v544_v25 = vpop.f32.mrf.mxu0 }
  0xe6   :  { %281 = vst.msk [vmem:[#allocation4] sm:$0xff] %vm40_vm2, %v280_v24 }
  0xe9   :  { %v329_v29 = vld [vmem:[#allocation2] sm:$0xff]  ;;  %v375_v42 = vld [vmem:[#allocation3] sm:$0xff] }
  0xea   :  { %v330_v32 = vmul.f32 2.0, %v329_v29  ;;  %v376_v46 = vmul.f32 2.0, %v375_v42 }
  0xed   :  { %v380_v41 = vld [vmem:[#allocation4] sm:$0xff] }
  0xee   :  { %v381_v45 = vmul.f32 2.0, %v380_v41 }
 0x12c   :  { %v322_v33 = vpop.permute.xlu1 %321 }
 0x12d   :  { %v303_v30 = vpop.trf.xlu0 }
 0x12e   :  { %v327_v31 = vrot.slane %v303_v30, %v326_v28 }
 0x130   :  { %v328_v35 = vadd.f32 %v327_v31, %v322_v33  ;;  %v368_v40 = vpop.permute.xlu1 %367 }
 0x132   :  { %v331_v36 = vsub.f32 %v328_v35, %v330_v32 }
 0x134   :  { %v332_v37 = vmax.f32 %v331_v36, 0.0 }
 0x136   :  { %v670_v38 = vsel %vm388_vm3, %v332_v37, 0.0 }
 0x137   :  { %v391_v39 = vsel %vm40_vm2, %v670_v38, 0.0  ;;  %v434_v15 = vsub.f32 0.0, %v670_v38 }
 0x138   :  { %392 = vadd.xlane.f32.xlu1 %v391_v39 }
 0x15a   :  { %v349_v43 = vpop.trf.xlu1 }
 0x15b   :  { %v373_v44 = vrot.slane %v349_v43, %v326_v28 }
 0x15d   :  { %v374_v47 = vadd.f32 %v373_v44, %v368_v40  ;;  %v379_v48 = vadd.f32 %v373_v44, %v322_v33 }
 0x15f   :  { %v382_v49 = vsub.f32 %v379_v48, %v381_v45  ;;  %v377_v50 = vsub.f32 %v374_v47, %v376_v46 }
 0x161   :  { %v383_v51 = vmax.f32 %v382_v49, 0.0  ;;  %v378_v52 = vmax.f32 %v377_v50, 0.0 }
 0x163   :  { %v412_v53 = vsel %vm40_vm2, %v383_v51, 0.0  ;;  %v390_v54 = vsel %vm388_vm3, %v378_v52, 0.0  ;;  %v479_v16 = vsub.f32 0.0, %v383_v51 }
 0x164   :  { %413 = vadd.xlane.f32.xlu1 %v412_v53  ;;  %v401_v55 = vsel %vm40_vm2, %v390_v54, 0.0  ;;  %v457_v17 = vsub.f32 0.0, %v390_v54 }
 0x165   :  { %402 = vadd.xlane.f32.xlu0 %v401_v55 }
 0x1c1   :  { %v393_v56 = vpop.xlane.xlu1 %392 }
 0x1c2   :  { %v394_v57 = vrot.slane %v393_v56, 4 }
 0x1c4   :  { %v395_v58 = vadd.f32 %v394_v57, %v393_v56 }
 0x1c6   :  { %v396_v59 = vrot.slane %v395_v58, 2 }
 0x1c8   :  { %v397_v60 = vadd.f32 %v396_v59, %v395_v58 }
 0x1ca   :  { %v398_v61 = vrot.slane %v397_v60, 1 }
 0x1cc   :  { %v399_v62 = vadd.f32 %v398_v61, %v397_v60 }
 0x1ce   :  { %545 = vpush %v399_v62 }
 0x1ed   :  { %v414_v63 = vpop.xlane.xlu1 %413 }
 0x1ee   :  { %v415_v0 = vrot.slane %v414_v63, 4  ;;  %v403_v1 = vpop.xlane.xlu0 %402 }
 0x1ef   :  { %v404_v2 = vrot.slane %v403_v1, 4 }
 0x1f0   :  { %v416_v3 = vadd.f32 %v415_v0, %v414_v63 }
 0x1f1   :  { %v405_v4 = vadd.f32 %v404_v2, %v403_v1 }
 0x1f2   :  { %v417_v5 = vrot.slane %v416_v3, 2 }
 0x1f3   :  { %v406_v6 = vrot.slane %v405_v4, 2 }
 0x1f4   :  { %v418_v7 = vadd.f32 %v417_v5, %v416_v3 }
 0x1f5   :  { %v407_v8 = vadd.f32 %v406_v6, %v405_v4 }
 0x1f6   :  { %v419_v9 = vrot.slane %v418_v7, 1 }
 0x1f7   :  { %v408_v10 = vrot.slane %v407_v8, 1 }
 0x1f8   :  { %v420_v11 = vadd.f32 %v419_v9, %v418_v7 }
 0x1f9   :  { %v409_v12 = vadd.f32 %v408_v10, %v407_v8 }
 0x1fb   :  { %547 = vpush %v409_v12 }
 0x1fc   :  { %549 = vpush %v420_v11 }
 0x1ff   :  { %s546_s0 = spop %545 }
 0x22c   :  { %s548_s1 = spop %547 }
 0x22d   :  { %s411_s19 = sadd.f32 %s548_s1, %s546_s0  ;;  %s550_s20 = spop %549 }
 0x22e   :  { %s422_s21 = smul.f32 2.0, %s550_s20 }
 0x230   :  { %s423_s22 = sadd.f32 %s422_s21, %s411_s19 }
 0x232   :  { %s426_s23 = smul.f32 0.004166667, %s423_s22 }
 0x234   :  { %s429_s24 = smul.f32 0.25, %s426_s23 }
 0x236   :  { %s430_s25 = smul.f32 16.0, %s429_s24 }
 0x238   :  { %v431_v13 = vstv %s430_s25 }
 0x239   :  { %567 = vrcp.f32 %v431_v13 }
 0x246   :  { %v568_v14 = vpop.eup %567 }
 0x247   :  { %551 = vpush %v568_v14 }
 0x278   :  { %s552_s26 = spop %551 }
 0x279   :  { %v435_v18 = vstv %s552_s26 }
 0x27a   :  { %v436_v19 = vmul.f32 %v435_v18, %v434_v15  ;;  %v458_v20 = vmul.f32 %v457_v17, %v435_v18  ;;  %v480_v21 = vmul.f32 %v479_v16, %v435_v18 }
 0x27c   :  { %v437_v22 = vmul.f32 1.442695, %v436_v19  ;;  %v459_v23 = vmul.f32 1.442695, %v458_v20  ;;  %v481_v24 = vmul.f32 1.442695, %v480_v21 }
 0x27e   :  { %569 = vpow2.f32 %v437_v22 }
 0x27f   :  { %571 = vpow2.f32 %v459_v23 }
 0x280   :  { %573 = vpow2.f32 %v481_v24 }
 0x28b   :  { %v570_v25 = vpop.eup %569 }
 0x28c   :  { %v572_v26 = vpop.eup %571  ;;  %v439_v27 = vmul.f32 %v570_v25, %v570_v25 }
 0x28d   :  { %v574_v28 = vpop.eup %573  ;;  %v461_v29 = vmul.f32 %v572_v26, %v572_v26 }
 0x28e   :  { %v483_v30 = vmul.f32 %v574_v28, %v574_v28  ;;  %v440_v31 = vadd.f32 %v570_v25, %v439_v27  ;;  %v441_v32 = vmul.f32 %v439_v27, %v439_v27 }
 0x28f   :  { %v462_v33 = vadd.f32 %v572_v26, %v461_v29  ;;  %v463_v34 = vmul.f32 %v461_v29, %v461_v29 }
 0x290   :  { %v484_v35 = vadd.f32 %v574_v28, %v483_v30  ;;  %v485_v36 = vmul.f32 %v483_v30, %v483_v30  ;;  %v442_v37 = vadd.f32 %v441_v32, %v440_v31  ;;  %v443_v38 = vmul.f32 %v441_v32, %v441_v32 }
 0x291   :  { %v464_v39 = vadd.f32 %v463_v34, %v462_v33  ;;  %v465_v40 = vmul.f32 %v463_v34, %v463_v34 }
 0x292   :  { %v486_v41 = vadd.f32 %v485_v36, %v484_v35  ;;  %v487_v42 = vmul.f32 %v485_v36, %v485_v36  ;;  %v444_v43 = vadd.f32 %v443_v38, %v442_v37  ;;  %v445_v44 = vmul.f32 %v443_v38, %v443_v38 }
 0x293   :  { %v466_v45 = vadd.f32 %v465_v40, %v464_v39  ;;  %v467_v46 = vmul.f32 %v465_v40, %v465_v40 }
 0x294   :  { %v488_v47 = vadd.f32 %v487_v42, %v486_v41  ;;  %v489_v48 = vmul.f32 %v487_v42, %v487_v42  ;;  %v446_v49 = vadd.f32 %v445_v44, %v444_v43 }
 0x295   :  { %v468_v52 = vadd.f32 %v467_v46, %v466_v45 }
 0x296   :  { %v490_v50 = vadd.f32 %v489_v48, %v488_v47  ;;  %v447_v51 = vsel %vm40_vm2, %v446_v49, 0.0 }
 0x297   :  { %448 = vadd.xlane.f32.xlu1 %v447_v51  ;;  %v469_v54 = vsel %vm40_vm2, %v468_v52, 0.0 }
 0x298   :  { %v491_v53 = vsel %vm40_vm2, %v490_v50, 0.0 }
 0x299   :  { %492 = vadd.xlane.f32.xlu0 %v491_v53 }
 0x29b   :  { %470 = vadd.xlane.f32.xlu1 %v469_v54 }
 0x320   :  { %v449_v55 = vpop.xlane.xlu1 %448 }
 0x321   :  { %v450_v56 = vrot.slane %v449_v55, 4 }
 0x322   :  { %v493_v57 = vpop.xlane.xlu0 %492 }
 0x323   :  { %v494_v58 = vrot.slane %v493_v57, 4  ;;  %v451_v59 = vadd.f32 %v450_v56, %v449_v55 }
 0x324   :  { %v471_v60 = vpop.xlane.xlu1 %470 }
 0x325   :  { %v495_v61 = vadd.f32 %v494_v58, %v493_v57  ;;  %v452_v62 = vrot.slane %v451_v59, 2  ;;  %v472_v63 = vrot.slane %v471_v60, 4 }
 0x327   :  { %v496_v0 = vrot.slane %v495_v61, 2  ;;  %v473_v1 = vadd.f32 %v472_v63, %v471_v60  ;;  %v453_v2 = vadd.f32 %v452_v62, %v451_v59 }
 0x329   :  { %v497_v3 = vadd.f32 %v496_v0, %v495_v61  ;;  %v474_v4 = vrot.slane %v473_v1, 2  ;;  %v454_v5 = vrot.slane %v453_v2, 1 }
 0x32b   :  { %v475_v6 = vadd.f32 %v474_v4, %v473_v1  ;;  %v455_v7 = vadd.f32 %v454_v5, %v453_v2  ;;  %v498_v8 = vrot.slane %v497_v3, 1 }
 0x32d   :  { %553 = vpush %v455_v7  ;;  %v476_v9 = vrot.slane %v475_v6, 1  ;;  %v499_v11 = vadd.f32 %v498_v8, %v497_v3 }
 0x32f   :  { %v477_v10 = vadd.f32 %v476_v9, %v475_v6 }
 0x331   :  { %555 = vpush %v477_v10 }
 0x332   :  { %557 = vpush %v499_v11 }
 0x35e   :  { %s554_s27 = spop %553 }
 0x362   :  { %s556_s28 = spop %555 }
 0x363   :  { %s501_s29 = sadd.f32 %s556_s28, %s554_s27  ;;  %s558_s30 = spop %557 }
 0x364   :  { %s502_s3 = smul.f32 2.0, %s558_s30 }
 0x366   :  { %s503_s4 = ssub.f32 %s501_s29, %s502_s3 }
 0x368   :  { %s506_s5 = smul.f32 0.015625, %s503_s4 }
 0x36a   :  { %508 = sst [smem:[#allocation12]] %s506_s5 }
 0x36b   :  { %516 = dma.smem_to_hbm %s634_s6, 16, %s686_s2, [#allocation9]  }
 0x36c   :  { %627 = dma.done.wait [#allocation9], 16  }
 0x36d   :  { %628 = vsyncadd [#allocation9], 4294967280 }
 0x36e   :  { %520 = sfence }
 0x36f   :  { %521 = vsyncpa [#allocation8], 1 }
 0x370   :  { %522 = vsyncpa [#allocation11], 1 }
 0x371   :  { %523 = vsyncpa [#allocation9], 1 }

</bundles_post_ra>
